<compile_context>
chip_gen: v5e
topology: v5e:2x2
jax: 0.10.0
libtpu: 0.0.40
codegen_flags: <defaults>
</compile_context>

<pallas_src>
import jax
import jax.numpy as jnp
from jax.experimental import pallas as pl
from jax.experimental.pallas import tpu as pltpu

BEST_HIDDEN = 64


def _mlp_kernel(x_ref, w1_ref, b1_ref, w2_ref, b2_ref, w3t_ref, b3_ref, o_ref):
    x = x_ref[...]                                    # (TB, D)

    # fc1 + ReLU (f32 accumulation on the MXU; bias/ReLU in f32 on the VPU)
    h1 = jnp.dot(x, w1_ref[...], preferred_element_type=jnp.float32)
    h1 = jnp.maximum(h1 + b1_ref[...], 0.0)           # (TB, H)

    # fc2 + ReLU
    h2 = jnp.dot(h1.astype(w2_ref.dtype), w2_ref[...],
                 preferred_element_type=jnp.float32)
    h2 = jnp.maximum(h2 + b2_ref[...], 0.0)           # (TB, 32)

    # fc3: out[i] = sum_k h2[i, k] * w3[k] + b3.
    # Computed as w3t (1,32) @ h2^T -> (1, TB) so the result is lane-dense
    # (avoids width-1 masked vector stores on the output path).
    out_row = jax.lax.dot_general(
        w3t_ref[...], h2.astype(w3t_ref.dtype),
        dimension_numbers=(((1,), (1,)), ((), ())),
        preferred_element_type=jnp.float32)
    out_row = out_row + b3_ref[...]                   # (1, TB)

    o_ref[...] = out_row[None].astype(o_ref.dtype)    # (1, 1, TB)


def _pick_block_b(batch, feat, itemsize):
    """~1 MiB of x per DMA, multiple of 128 rows, capped at 32K rows and at the
    128-padded batch (so tiny demo batches don't over-pad)."""
    tb = max(128, ((1 << 20) // (feat * itemsize)) // 128 * 128)
    tb = min(tb, 32768, ((batch + 127) // 128) * 128)
    return tb


def neural_forward(x, params, *, block_b=None, vmem_limit_bytes=64 * 1024 * 1024):
    """Fused 3-layer MLP.  x: (B, input_dim); returns (B, 1) float32."""
    w1, b1 = params["w1"], params["b1"]
    w2, b2 = params["w2"], params["b2"]
    w3, b3 = params["w3"], params["b3"]

    B, D = x.shape
    H = w1.shape[1]

    # Weights follow x's dtype (bf16-friendly); biases stay f32.
    w1 = w1.astype(x.dtype)
    w2 = w2.astype(x.dtype)
    w3t = jnp.transpose(w3).astype(x.dtype)           # (1, 32)
    b1 = b1.astype(jnp.float32)
    b2 = b2.astype(jnp.float32)
    b3 = b3.astype(jnp.float32)

    if block_b is None:
        block_b = _pick_block_b(B, D, jnp.dtype(x.dtype).itemsize)
    assert block_b % 128 == 0, "block_b must be a multiple of 128"

    grid = pl.cdiv(B, block_b)
    b_pad = grid * block_b
    if b_pad != B:
        x = jnp.pad(x, ((0, b_pad - B), (0, 0)))

    # Full-size blocks with a constant index_map -> stays resident in VMEM.
    resident = lambda a: pl.BlockSpec(a.shape, lambda i: (0,) * a.ndim)

    out = pl.pallas_call(
        _mlp_kernel,
        out_shape=jax.ShapeDtypeStruct((grid, 1, block_b), jnp.float32),
        grid=(grid,),
        in_specs=[
            pl.BlockSpec((block_b, D), lambda i: (i, 0)),   # x: tiled over batch
            resident(w1), resident(b1),
            resident(w2), resident(b2),
            resident(w3t), resident(b3),
        ],
        out_specs=pl.BlockSpec((1, 1, block_b), lambda i: (i, 0, 0)),
        compiler_params=pltpu.CompilerParams(
            dimension_semantics=("parallel",),
            vmem_limit_bytes=vmem_limit_bytes,
        ),
    )(x, w1, b1, w2, b2, w3t, b3)

    # (grid, 1, block_b) -> (b_pad,) -> drop padding -> (B, 1)
    return out.reshape(-1)[:B].reshape(B, 1)


def init_params(key, input_dim, hidden=BEST_HIDDEN):
    """Deterministic parameter init (PyTorch Linear-style uniform bounds).
    Weights stored pre-transposed as (in, out) so the kernel does x @ W."""
    ks = jax.random.split(key, 6)

    def lin(kw, kb, fan_in, fan_out):
        bound = 1.0 / jnp.sqrt(fan_in)
        w = jax.random.uniform(kw, (fan_in, fan_out), jnp.float32, -bound, bound)
        b = jax.random.uniform(kb, (1, fan_out), jnp.float32, -bound, bound)
        return w, b

    w1, b1 = lin(ks[0], ks[1], input_dim, hidden)
    w2, b2 = lin(ks[2], ks[3], hidden, 32)
    w3, b3 = lin(ks[4], ks[5], 32, 1)
    return {"w1": w1, "b1": b1, "w2": w2, "b2": b2, "w3": w3, "b3": b3}


def neural_forward_ref(x, p):
    """Pure-JAX reference for sanity checking."""
    h1 = jnp.maximum(x @ p["w1"] + p["b1"], 0.0)
    h2 = jnp.maximum(h1 @ p["w2"] + p["b2"], 0.0)
    return h2 @ p["w3"] + p["b3"]


if __name__ == "__main__":
    key = jax.random.PRNGKey(0)
    k_x, k_p = jax.random.split(key)

    batch, input_dim = 8, 32
    x = jax.random.normal(k_x, (batch, input_dim), dtype=jnp.float32)
    params = init_params(k_p, input_dim)

    # Small f32 run (single tile, padded batch).
    out = jax.block_until_ready(neural_forward(x, params))
    ref = neural_forward_ref(x, params)
    assert out.shape == (batch, 1), out.shape
    assert jnp.allclose(out, ref, atol=1e-5, rtol=1e-5), "mismatch vs reference"

    # Multi-tile grid with a partial last tile (exercises pipelining + padding).
    big_b = 300
    xb = jax.random.normal(k_x, (big_b, input_dim), dtype=jnp.float32)
    outb = jax.block_until_ready(neural_forward(xb, params, block_b=128))
    refb = neural_forward_ref(xb, params)
    assert outb.shape == (big_b, 1), outb.shape
    assert jnp.allclose(outb, refb, atol=1e-5, rtol=1e-5), "tiled mismatch"

    # bf16 input path (halves HBM bytes for x; f32 MXU accumulation).
    out_bf = jax.block_until_ready(neural_forward(xb.astype(jnp.bfloat16), params))
    assert out_bf.shape == (big_b, 1)
    assert bool(jnp.all(jnp.isfinite(out_bf)))

    print("KERNEL_OK")
</pallas_src>

<mosaic_0001>
module attributes {stable_mosaic.version = 11 : i64} {
  func.func @_mlp_kernel(%arg0: i32, %arg1: memref<128x32xf32, #tpu.memory_space<vmem>>, %arg2: memref<32x64xf32, #tpu.memory_space<vmem>>, %arg3: memref<1x64xf32, #tpu.memory_space<vmem>>, %arg4: memref<64x32xf32, #tpu.memory_space<vmem>>, %arg5: memref<1x32xf32, #tpu.memory_space<vmem>>, %arg6: memref<1x32xf32, #tpu.memory_space<vmem>>, %arg7: memref<1x1xf32, #tpu.memory_space<vmem>>, %arg8: memref<1x1x128xf32, #tpu.memory_space<vmem>>) attributes {dimension_semantics = [#tpu.dimension_semantics<parallel>], iteration_bounds = array<i64: 1>, scalar_prefetch = 0 : i64, scratch_operands = 0 : i64, tpu.core_type = #tpu.core_type<tc>, window_params = [{transform_indices = @transform_0, window_bounds = array<i64: 128, 32>}, {pipeline_mode = #tpu.pipeline_mode<synchronous>, transform_indices = @transform_1, window_bounds = array<i64: 32, 64>}, {pipeline_mode = #tpu.pipeline_mode<synchronous>, transform_indices = @transform_2, window_bounds = array<i64: 1, 64>}, {pipeline_mode = #tpu.pipeline_mode<synchronous>, transform_indices = @transform_3, window_bounds = array<i64: 64, 32>}, {pipeline_mode = #tpu.pipeline_mode<synchronous>, transform_indices = @transform_4, window_bounds = array<i64: 1, 32>}, {pipeline_mode = #tpu.pipeline_mode<synchronous>, transform_indices = @transform_5, window_bounds = array<i64: 1, 32>}, {pipeline_mode = #tpu.pipeline_mode<synchronous>, transform_indices = @transform_6, window_bounds = array<i64: 1, 1>}, {transform_indices = @transform_7, window_bounds = array<i64: 1, 1, 128>}]} {
    %c0 = arith.constant 0 : index
    %c0_0 = arith.constant 0 : index
    %0 = vector.load %arg1[%c0, %c0_0] : memref<128x32xf32, #tpu.memory_space<vmem>>, vector<128x32xf32>
    %c0_1 = arith.constant 0 : index
    %c0_2 = arith.constant 0 : index
    %1 = vector.load %arg2[%c0_1, %c0_2] : memref<32x64xf32, #tpu.memory_space<vmem>>, vector<32x64xf32>
    %cst = arith.constant dense<0.000000e+00> : vector<128x64xf32>
    %2 = tpu.matmul %0, %1, %cst {dimension_numbers = #tpu.dot_dimension_numbers<[1], [0], [0], [1], [0, 0, 1, 1], [], []>} : vector<128x32xf32>, vector<32x64xf32>, vector<128x64xf32> -> vector<128x64xf32>
    %c0_3 = arith.constant 0 : index
    %c0_4 = arith.constant 0 : index
    %3 = vector.load %arg3[%c0_3, %c0_4] : memref<1x64xf32, #tpu.memory_space<vmem>>, vector<1x64xf32>
    %4 = vector.broadcast %3 : vector<1x64xf32> to vector<128x64xf32>
    %5 = arith.addf %2, %4 : vector<128x64xf32>
    %cst_5 = arith.constant 0.000000e+00 : f32
    %6 = vector.broadcast %cst_5 : f32 to vector<128x64xf32>
    %7 = arith.maximumf %5, %6 : vector<128x64xf32>
    %c0_6 = arith.constant 0 : index
    %c0_7 = arith.constant 0 : index
    %8 = vector.load %arg4[%c0_6, %c0_7] : memref<64x32xf32, #tpu.memory_space<vmem>>, vector<64x32xf32>
    %cst_8 = arith.constant dense<0.000000e+00> : vector<128x32xf32>
    %9 = tpu.matmul %7, %8, %cst_8 {dimension_numbers = #tpu.dot_dimension_numbers<[1], [0], [0], [1], [0, 0, 1, 1], [], []>} : vector<128x64xf32>, vector<64x32xf32>, vector<128x32xf32> -> vector<128x32xf32>
    %c0_9 = arith.constant 0 : index
    %c0_10 = arith.constant 0 : index
    %10 = vector.load %arg5[%c0_9, %c0_10] : memref<1x32xf32, #tpu.memory_space<vmem>>, vector<1x32xf32>
    %11 = vector.broadcast %10 : vector<1x32xf32> to vector<128x32xf32>
    %12 = arith.addf %9, %11 : vector<128x32xf32>
    %cst_11 = arith.constant 0.000000e+00 : f32
    %13 = vector.broadcast %cst_11 : f32 to vector<128x32xf32>
    %14 = arith.maximumf %12, %13 : vector<128x32xf32>
    %c0_12 = arith.constant 0 : index
    %c0_13 = arith.constant 0 : index
    %15 = vector.load %arg6[%c0_12, %c0_13] : memref<1x32xf32, #tpu.memory_space<vmem>>, vector<1x32xf32>
    %cst_14 = arith.constant dense<0.000000e+00> : vector<1x128xf32>
    %16 = tpu.matmul %15, %14, %cst_14 {dimension_numbers = #tpu.dot_dimension_numbers<[1], [1], [0], [0], [0, 0, 1, 0], [], []>} : vector<1x32xf32>, vector<128x32xf32>, vector<1x128xf32> -> vector<1x128xf32>
    %c0_15 = arith.constant 0 : index
    %c0_16 = arith.constant 0 : index
    %17 = vector.load %arg7[%c0_15, %c0_16] : memref<1x1xf32, #tpu.memory_space<vmem>>, vector<1x1xf32>
    %18 = vector.broadcast %17 : vector<1x1xf32> to vector<1x128xf32>
    %19 = arith.addf %16, %18 : vector<1x128xf32>
    %20 = vector.shape_cast %19 : vector<1x128xf32> to vector<1x1x128xf32>
    %c0_17 = arith.constant 0 : index
    %c0_18 = arith.constant 0 : index
    %c0_19 = arith.constant 0 : index
    %21 = vector.load %arg8[%c0_17, %c0_18, %c0_19] : memref<1x1x128xf32, #tpu.memory_space<vmem>>, vector<1x1x128xf32>
    tpu.vector_store %arg8[%c0_17, %c0_18, %c0_19], %20 {strides = array<i32>} : memref<1x1x128xf32, #tpu.memory_space<vmem>>, vector<1x1x128xf32>,
    return
  }
  func.func @transform_0(%arg0: i32) -> (i32, i32) {
    %c0_i32 = arith.constant 0 : i32
    %c0_i32_0 = arith.constant 0 : i32
    return %arg0, %c0_i32 : i32, i32
  }
  func.func @transform_1(%arg0: i32) -> (i32, i32) {
    %c0_i32 = arith.constant 0 : i32
    %c0_i32_0 = arith.constant 0 : i32
    %c0_i32_1 = arith.constant 0 : i32
    return %c0_i32, %c0_i32_0 : i32, i32
  }
  func.func @transform_2(%arg0: i32) -> (i32, i32) {
    %c0_i32 = arith.constant 0 : i32
    %c0_i32_0 = arith.constant 0 : i32
    %c0_i32_1 = arith.constant 0 : i32
    return %c0_i32, %c0_i32_0 : i32, i32
  }
  func.func @transform_3(%arg0: i32) -> (i32, i32) {
    %c0_i32 = arith.constant 0 : i32
    %c0_i32_0 = arith.constant 0 : i32
    %c0_i32_1 = arith.constant 0 : i32
    return %c0_i32, %c0_i32_0 : i32, i32
  }
  func.func @transform_4(%arg0: i32) -> (i32, i32) {
    %c0_i32 = arith.constant 0 : i32
    %c0_i32_0 = arith.constant 0 : i32
    %c0_i32_1 = arith.constant 0 : i32
    return %c0_i32, %c0_i32_0 : i32, i32
  }
  func.func @transform_5(%arg0: i32) -> (i32, i32) {
    %c0_i32 = arith.constant 0 : i32
    %c0_i32_0 = arith.constant 0 : i32
    %c0_i32_1 = arith.constant 0 : i32
    return %c0_i32, %c0_i32_0 : i32, i32
  }
  func.func @transform_6(%arg0: i32) -> (i32, i32) {
    %c0_i32 = arith.constant 0 : i32
    %c0_i32_0 = arith.constant 0 : i32
    %c0_i32_1 = arith.constant 0 : i32
    return %c0_i32, %c0_i32_0 : i32, i32
  }
  func.func @transform_7(%arg0: i32) -> (i32, i32, i32) {
    %c0_i32 = arith.constant 0 : i32
    %c0_i32_0 = arith.constant 0 : i32
    %c0_i32_1 = arith.constant 0 : i32
    return %arg0, %c0_i32, %c0_i32_0 : i32, i32, i32
  }
}

</mosaic_0001>

<bundles_post_ra>
// kernel: tpu_custom_call.1
= control target key start
LH: loop header
LB: loop body
LE: loop exit
PB: predicated region body
PF: predicated region fallthrough
CT: control target
= control target key end

     0   :  { %s724_s0 = inlined_call_operand.vmem [shape: f32[128,32], index: 0, kind: input, shape index: {}]   ;;  %s725_s1 = inlined_call_operand.vmem [shape: f32[32,64], index: 1, kind: input, shape index: {}]   ;;  %s726_s2 = inlined_call_operand.vmem [shape: f32[1,64], index: 2, kind: input, shape index: {}]   ;;  %s727_s3 = inlined_call_operand.vmem [shape: f32[64,32], index: 3, kind: input, shape index: {}]   ;;  %s728_s4 = inlined_call_operand.vmem [shape: f32[1,32], index: 4, kind: input, shape index: {}]   ;;  %s729_s5 = inlined_call_operand.vmem [shape: f32[1,32], index: 5, kind: input, shape index: {}]   ;;  %s730_s6 = inlined_call_operand.<no memory space> [shape: f32[1,1], index: 6, kind: input, shape index: {}]   ;;  %s731_s7 = inlined_call_operand.hbm [shape: f32[1,1,128], index: 7, kind: output, shape index: {}]  }
   0x1   :  { %v12_v0 = vstv %s730_s6 }
   0x2   :  { %13 = vst [vmem:[#allocation2] sm:$0x1] %v12_v0 }
   0x3   :  { %v48_v1 = vld [vmem:[%s725_s1 + $0x18] sm:$0xff]  ;;  %v47_v2 = vld [vmem:[%s725_s1 + $0x10] sm:$0xff]  ;;  %v46_v3 = vld [vmem:[%s725_s1 + $0x8] sm:$0xff] }
   0x4   :  { %114 = vmatpush.msra.mxu0 %v48_v1  ;;  %470 = vmatpush.msra.mxu3 %v48_v1 }
   0x6   :  { %115 = vmatpush.msra.mxu0 %v47_v2  ;;  %471 = vmatpush.msra.mxu3 %v47_v2 }
   0x7   :  { %14 = vsyncpa [#allocation4], 0  ;;  %v45_v4 = vld [vmem:[%s725_s1] sm:$0xff]  ;;  %vm53_vm0 = vcmask 261120   ;;  %v30_v6 = vld [vmem:[%s724_s0 + $0x8] sm:$0xff]  ;;  %vm195_vm1 = vcmask 523264  }
   0x8   :  { %116 = vmatpush.msra.mxu0 %v46_v3  ;;  %v29_v5 = vld [vmem:[%s724_s0] sm:$0xff]  ;;  %472 = vmatpush.msra.mxu3 %v46_v3  ;;  %v31_v7 = vld [vmem:[%s724_s0 + $0x10] sm:$0xff]  ;;  %v32_v8 = vld [vmem:[%s724_s0 + $0x18] sm:$0xff]  ;;  %s514_s10 = smov [#allocation3]   ;;  %s412_s14 = sshll.u32 %s731_s7, 4  ;;  %s413_s14 = int_to_ptr.hbm [resolvable:$true] %s412_s14 }
   0x9   :  { %v33_v9 = vld [vmem:[%s724_s0 + $0x20] sm:$0xff]  ;;  %v34_v10 = vld [vmem:[%s724_s0 + $0x28] sm:$0xff]  ;;  %v35_v11 = vld [vmem:[%s724_s0 + $0x30] sm:$0xff]  ;;  %s410_s11 = sshll.u32 %s514_s10, 4  ;;  %s411_s11 = int_to_ptr.vmem [resolvable:$true] %s410_s11 }
   0xa   :  { %117 = vmatpush.msra.mxu0 %v45_v4  ;;  %473 = vmatpush.msra.mxu3 %v45_v4  ;;  %v40_v12 = vld [vmem:[%s724_s0 + $0x58] sm:$0xff]  ;;  %v189_v14 = vld [vmem:[%s727_s3 + $0x30] sm:$0xff]  ;;  %v188_v15 = vld [vmem:[%s727_s3 + $0x28] sm:$0xff] }
   0xb   :  { %421 = vmatmul.msk.f32.vlgmr.msra.gmra.mxu0 %vm53_vm0, %v29_v5  ;;  %432 = vmatmul.msk.f32.vlgmr.msra.gmra.mxu3 %vm53_vm0, %v40_v12  ;;  %v190_v13 = vld [vmem:[%s727_s3 + $0x38] sm:$0xff]  ;;  %v187_v17 = vld [vmem:[%s727_s3 + $0x20] sm:$0xff]  ;;  %v42_v21 = vld [vmem:[%s724_s0 + $0x68] sm:$0xff] }
   0xc   :  { %252 = vmatpush.msra.mxu1 %v190_v13  ;;  %474 = vmatpush.msrb.mxu3 %v190_v13  ;;  %v36_v16 = vld [vmem:[%s724_s0 + $0x38] sm:$0xff]  ;;  %v41_v18 = vld [vmem:[%s724_s0 + $0x60] sm:$0xff]  ;;  %v38_v22 = vld [vmem:[%s724_s0 + $0x48] sm:$0xff] }
   0xd   :  { %v186_v19 = vld [vmem:[%s727_s3 + $0x18] sm:$0xff]  ;;  %v37_v20 = vld [vmem:[%s724_s0 + $0x40] sm:$0xff]  ;;  %v43_v23 = vld [vmem:[%s724_s0 + $0x70] sm:$0xff] }
   0xe   :  { %253 = vmatpush.msra.mxu1 %v189_v14  ;;  %475 = vmatpush.msrb.mxu3 %v189_v14  ;;  %v39_v24 = vld [vmem:[%s724_s0 + $0x50] sm:$0xff]  ;;  %v44_v25 = vld [vmem:[%s724_s0 + $0x78] sm:$0xff]  ;;  %v184_v27 = vld [vmem:[%s727_s3 + $0x8] sm:$0xff] }
   0xf   :  { %v185_v26 = vld [vmem:[%s727_s3 + $0x10] sm:$0xff]  ;;  %v183_v28 = vld [vmem:[%s727_s3] sm:$0xff] }
  0x10   :  { %254 = vmatpush.msra.mxu1 %v188_v15  ;;  %476 = vmatpush.msrb.mxu3 %v188_v15  ;;  %v661_v29 = vld [vmem:[%s726_s2] ss:$0 sm:$0xff] }
  0x12   :  { %255 = vmatpush.msra.mxu1 %v187_v17  ;;  %477 = vmatpush.msrb.mxu3 %v187_v17 }
  0x13   :  { %422 = vmatmul.msk.f32.gmra.mxu0 %vm53_vm0, %v30_v6  ;;  %433 = vmatmul.msk.f32.gmra.mxu3 %vm53_vm0, %v41_v18 }
  0x14   :  { %256 = vmatpush.msra.mxu1 %v186_v19  ;;  %478 = vmatpush.msrb.mxu3 %v186_v19 }
  0x16   :  { %257 = vmatpush.msra.mxu1 %v185_v26  ;;  %479 = vmatpush.msrb.mxu3 %v185_v26  ;;  %v486_v26 = vld [vmem:[%s728_s4] ss:$0 sm:$0xff] }
  0x18   :  { %258 = vmatpush.msra.mxu1 %v184_v27  ;;  %480 = vmatpush.msrb.mxu3 %v184_v27 }
  0x1a   :  { %259 = vmatpush.msra.mxu1 %v183_v28  ;;  %481 = vmatpush.msrb.mxu3 %v183_v28 }
  0x1b   :  { %423 = vmatmul.msk.f32.gmra.mxu0 %vm53_vm0, %v31_v7  ;;  %434 = vmatmul.msk.f32.gmra.mxu3 %vm53_vm0, %v42_v21 }
  0x23   :  { %424 = vmatmul.msk.f32.gmra.mxu0 %vm53_vm0, %v32_v8  ;;  %435 = vmatmul.msk.f32.gmra.mxu3 %vm53_vm0, %v43_v23 }
  0x2b   :  { %425 = vmatmul.msk.f32.gmra.mxu0 %vm53_vm0, %v33_v9  ;;  %436 = vmatmul.msk.f32.gmra.mxu3 %vm53_vm0, %v44_v25 }
  0x33   :  { %426 = vmatmul.msk.f32.gmra.mxu0 %vm53_vm0, %v34_v10 }
  0x3b   :  { %427 = vmatmul.msk.f32.gmra.mxu0 %vm53_vm0, %v35_v11 }
  0x43   :  { %428 = vmatmul.msk.f32.gmra.mxu0 %vm53_vm0, %v36_v16 }
  0x4b   :  { %429 = vmatmul.msk.f32.gmra.mxu0 %vm53_vm0, %v37_v20 }
  0x53   :  { %430 = vmatmul.msk.f32.gmra.mxu0 %vm53_vm0, %v38_v22 }
  0x5b   :  { %431 = vmatmul.msk.f32.gmra.mxu0 %vm53_vm0, %v39_v24 }
  0x88   :  { %v119_v30 = vpop.f32.mrf.mxu0 }
  0x89   :  { %v120_v31 = vadd.f32 %v661_v29, %v119_v30 }
  0x8b   :  { %v167_v32 = vmax.f32 %v120_v31, 0.0 }
  0x8d   :  { %437 = vmatmul.msk.f32.vlgmr.msra.gmra.mxu1 %vm195_vm1, %v167_v32 }
  0x8e   :  { %v152_v59 = vpop.f32.mrf.mxu3 }
  0x8f   :  { %v153_v1 = vadd.f32 %v661_v29, %v152_v59 }
  0x90   :  { %v122_v33 = vpop.f32.mrf.mxu0 }
  0x91   :  { %v123_v34 = vadd.f32 %v661_v29, %v122_v33  ;;  %v178_v2 = vmax.f32 %v153_v1, 0.0  ;;  %v325_v1 = vld [vmem:[%s729_s5] sm:$0x1] }
  0x93   :  { %v168_v35 = vmax.f32 %v123_v34, 0.0 }
  0x95   :  { %438 = vmatmul.msk.f32.gmra.mxu1 %vm195_vm1, %v168_v35 }
  0x96   :  { %v155_v0 = vpop.f32.mrf.mxu3 }
  0x97   :  { %v156_v3 = vadd.f32 %v661_v29, %v155_v0 }
  0x98   :  { %v125_v36 = vpop.f32.mrf.mxu0 }
  0x99   :  { %v126_v37 = vadd.f32 %v661_v29, %v125_v36  ;;  %v179_v5 = vmax.f32 %v156_v3, 0.0 }
  0x9b   :  { %v169_v38 = vmax.f32 %v126_v37, 0.0 }
  0x9d   :  { %439 = vmatmul.msk.f32.gmra.mxu1 %vm195_vm1, %v169_v38 }
  0x9e   :  { %v158_v4 = vpop.f32.mrf.mxu3 }
  0x9f   :  { %v159_v6 = vadd.f32 %v661_v29, %v158_v4 }
  0xa0   :  { %v128_v39 = vpop.f32.mrf.mxu0 }
  0xa1   :  { %v129_v40 = vadd.f32 %v661_v29, %v128_v39  ;;  %v180_v8 = vmax.f32 %v159_v6, 0.0 }
  0xa3   :  { %v170_v41 = vmax.f32 %v129_v40, 0.0 }
  0xa5   :  { %440 = vmatmul.msk.f32.gmra.mxu1 %vm195_vm1, %v170_v41 }
  0xa6   :  { %v161_v7 = vpop.f32.mrf.mxu3 }
  0xa7   :  { %v162_v9 = vadd.f32 %v661_v29, %v161_v7 }
  0xa8   :  { %v131_v42 = vpop.f32.mrf.mxu0 }
  0xa9   :  { %v132_v43 = vadd.f32 %v661_v29, %v131_v42  ;;  %v181_v10 = vmax.f32 %v162_v9, 0.0 }
  0xab   :  { %v171_v44 = vmax.f32 %v132_v43, 0.0 }
  0xad   :  { %441 = vmatmul.msk.f32.gmra.mxu1 %vm195_vm1, %v171_v44 }
  0xae   :  { %v164_v11 = vpop.f32.mrf.mxu3 }
  0xaf   :  { %v165_v12 = vadd.f32 %v661_v29, %v164_v11 }
  0xb0   :  { %v134_v45 = vpop.f32.mrf.mxu0 }
  0xb1   :  { %v135_v46 = vadd.f32 %v661_v29, %v134_v45  ;;  %v182_v13 = vmax.f32 %v165_v12, 0.0 }
  0xb3   :  { %v172_v47 = vmax.f32 %v135_v46, 0.0 }
  0xb5   :  { %442 = vmatmul.msk.f32.gmra.mxu1 %vm195_vm1, %v172_v47 }
  0xb8   :  { %v137_v48 = vpop.f32.mrf.mxu0 }
  0xb9   :  { %v138_v49 = vadd.f32 %v661_v29, %v137_v48 }
  0xbb   :  { %v173_v50 = vmax.f32 %v138_v49, 0.0 }
  0xbd   :  { %443 = vmatmul.msk.f32.gmra.mxu1 %vm195_vm1, %v173_v50  ;;  %v326_v50 = vld [vmem:[#allocation2] sm:$0x1] }
  0xc0   :  { %v140_v51 = vpop.f32.mrf.mxu0 }
  0xc1   :  { %v141_v52 = vadd.f32 %v661_v29, %v140_v51  ;;  %v513_v51 = vmov 0  }
  0xc2   :  { %484 = vset.pattern.permute.xlu0 %v513_v51 }
  0xc3   :  { %v174_v53 = vmax.f32 %v141_v52, 0.0  ;;  %329 = vperm.xlu0 %484, %v326_v50  }
  0xc5   :  { %444 = vmatmul.msk.f32.gmra.mxu1 %vm195_vm1, %v174_v53 }
  0xc8   :  { %v143_v54 = vpop.f32.mrf.mxu0 }
  0xc9   :  { %v144_v55 = vadd.f32 %v661_v29, %v143_v54 }
  0xcb   :  { %v175_v56 = vmax.f32 %v144_v55, 0.0 }
  0xcd   :  { %445 = vmatmul.msk.f32.gmra.mxu1 %vm195_vm1, %v175_v56 }
  0xd0   :  { %v146_v57 = vpop.f32.mrf.mxu0 }
  0xd1   :  { %v147_v58 = vadd.f32 %v661_v29, %v146_v57 }
  0xd3   :  { %v176_v60 = vmax.f32 %v147_v58, 0.0 }
  0xd5   :  { %446 = vmatmul.msk.f32.gmra.mxu1 %vm195_vm1, %v176_v60 }
  0xd8   :  { %v149_v61 = vpop.f32.mrf.mxu0 }
  0xd9   :  { %v150_v62 = vadd.f32 %v661_v29, %v149_v61 }
  0xdb   :  { %v177_v63 = vmax.f32 %v150_v62, 0.0 }
  0xdd   :  { %447 = vmatmul.msk.f32.vlgmr.msrb.gmra.mxu3 %vm195_vm1, %v177_v63 }
  0xe5   :  { %448 = vmatmul.msk.f32.gmra.mxu3 %vm195_vm1, %v178_v2 }
  0xed   :  { %449 = vmatmul.msk.f32.gmra.mxu3 %vm195_vm1, %v179_v5 }
  0xf5   :  { %450 = vmatmul.msk.f32.gmra.mxu3 %vm195_vm1, %v180_v8 }
  0xfd   :  { %451 = vmatmul.msk.f32.gmra.mxu3 %vm195_vm1, %v181_v10 }
 0x105   :  { %452 = vmatmul.msk.f32.gmra.mxu3 %vm195_vm1, %v182_v13 }
 0x10a   :  { %v695_v14 = vpop.f32.mrf.mxu1 }
 0x10b   :  { %v262_v62 = vadd.f32 %v486_v26, %v695_v14 }
 0x10d   :  { %v309_v0 = vmax.f32 %v262_v62, 0.0 }
 0x112   :  { %v264_v15 = vpop.f32.mrf.mxu1 }
 0x113   :  { %v265_v60 = vadd.f32 %v486_v26, %v264_v15 }
 0x115   :  { %v310_v63 = vmax.f32 %v265_v60, 0.0 }
 0x11a   :  { %v267_v16 = vpop.f32.mrf.mxu1 }
 0x11b   :  { %v268_v58 = vadd.f32 %v486_v26, %v267_v16 }
 0x11d   :  { %v311_v61 = vmax.f32 %v268_v58, 0.0 }
 0x122   :  { %v270_v17 = vpop.f32.mrf.mxu1 }
 0x123   :  { %v271_v56 = vadd.f32 %v486_v26, %v270_v17 }
 0x125   :  { %v312_v59 = vmax.f32 %v271_v56, 0.0 }
 0x12a   :  { %v273_v20 = vpop.f32.mrf.mxu1 }
 0x12b   :  { %v274_v54 = vadd.f32 %v486_v26, %v273_v20 }
 0x12d   :  { %v313_v57 = vmax.f32 %v274_v54, 0.0 }
 0x132   :  { %v276_v22 = vpop.f32.mrf.mxu1 }
 0x133   :  { %v277_v52 = vadd.f32 %v486_v26, %v276_v22 }
 0x135   :  { %v314_v55 = vmax.f32 %v277_v52, 0.0  ;;  %v330_v2 = vpop.permute.xlu0 %329 }
 0x136   :  { %v332_v3 = vperm.slane %v330_v2, 0 }
 0x13a   :  { %v279_v24 = vpop.f32.mrf.mxu1 }
 0x13b   :  { %v280_v48 = vadd.f32 %v486_v26, %v279_v24 }
 0x13d   :  { %v315_v53 = vmax.f32 %v280_v48, 0.0 }
 0x142   :  { %v282_v27 = vpop.f32.mrf.mxu1 }
 0x143   :  { %v283_v46 = vadd.f32 %v486_v26, %v282_v27 }
 0x145   :  { %v316_v49 = vmax.f32 %v283_v46, 0.0 }
 0x14a   :  { %v285_v34 = vpop.f32.mrf.mxu1 }
 0x14b   :  { %v286_v44 = vadd.f32 %v486_v26, %v285_v34 }
 0x14d   :  { %v317_v47 = vmax.f32 %v286_v44, 0.0 }
 0x152   :  { %v288_v41 = vpop.f32.mrf.mxu1 }
 0x153   :  { %v289_v42 = vadd.f32 %v486_v26, %v288_v41 }
 0x155   :  { %v318_v45 = vmax.f32 %v289_v42, 0.0 }
 0x160   :  { %v291_v18 = vpop.f32.mrf.mxu3 }
 0x161   :  { %v292_v39 = vadd.f32 %v486_v26, %v291_v18 }
 0x163   :  { %v319_v43 = vmax.f32 %v292_v39, 0.0 }
 0x168   :  { %v294_v19 = vpop.f32.mrf.mxu3 }
 0x169   :  { %v295_v37 = vadd.f32 %v486_v26, %v294_v19 }
 0x16b   :  { %v320_v40 = vmax.f32 %v295_v37, 0.0 }
 0x170   :  { %v297_v21 = vpop.f32.mrf.mxu3 }
 0x171   :  { %v298_v35 = vadd.f32 %v486_v26, %v297_v21 }
 0x173   :  { %v321_v38 = vmax.f32 %v298_v35, 0.0 }
 0x178   :  { %v300_v23 = vpop.f32.mrf.mxu3 }
 0x179   :  { %v301_v32 = vadd.f32 %v486_v26, %v300_v23 }
 0x17b   :  { %v322_v36 = vmax.f32 %v301_v32, 0.0 }
 0x180   :  { %v303_v25 = vpop.f32.mrf.mxu3 }
 0x181   :  { %v304_v30 = vadd.f32 %v486_v26, %v303_v25 }
 0x183   :  { %v323_v33 = vmax.f32 %v304_v30, 0.0 }
 0x188   :  { %v306_v28 = vpop.f32.mrf.mxu3 }
 0x189   :  { %v307_v29 = vadd.f32 %v486_v26, %v306_v28 }
 0x18b   :  { %v324_v31 = vmax.f32 %v307_v29, 0.0 }
 0x18d   :  { %453 = vmatpush.xpose.msk.msra.mxu2 %vm53_vm0, %v324_v31 }
 0x191   :  { %454 = vmatpush.xpose.msk.msra.mxu2 %vm53_vm0, %v323_v33 }
 0x195   :  { %455 = vmatpush.xpose.msk.msra.mxu2 %vm53_vm0, %v322_v36 }
 0x199   :  { %456 = vmatpush.xpose.msk.msra.mxu2 %vm53_vm0, %v321_v38 }
 0x19d   :  { %457 = vmatpush.xpose.msk.msra.mxu2 %vm53_vm0, %v320_v40 }
 0x1a1   :  { %458 = vmatpush.xpose.msk.msra.mxu2 %vm53_vm0, %v319_v43 }
 0x1a5   :  { %459 = vmatpush.xpose.msk.msra.mxu2 %vm53_vm0, %v318_v45 }
 0x1a9   :  { %460 = vmatpush.xpose.msk.msra.mxu2 %vm53_vm0, %v317_v47 }
 0x1ad   :  { %461 = vmatpush.xpose.msk.msra.mxu2 %vm53_vm0, %v316_v49 }
 0x1b1   :  { %462 = vmatpush.xpose.msk.msra.mxu2 %vm53_vm0, %v315_v53 }
 0x1b5   :  { %463 = vmatpush.xpose.msk.msra.mxu2 %vm53_vm0, %v314_v55 }
 0x1b9   :  { %464 = vmatpush.xpose.msk.msra.mxu2 %vm53_vm0, %v313_v57 }
 0x1bd   :  { %465 = vmatpush.xpose.msk.msra.mxu2 %vm53_vm0, %v312_v59 }
 0x1c1   :  { %466 = vmatpush.xpose.msk.msra.mxu2 %vm53_vm0, %v311_v61 }
 0x1c5   :  { %467 = vmatpush.xpose.msk.msra.mxu2 %vm53_vm0, %v310_v63 }
 0x1c9   :  { %468 = vmatpush.xpose.msk.msra.mxu2 %vm53_vm0, %v309_v0 }
 0x1cc   :  { %469 = vmatmul.msk.f32.vlgmr.msra.gmra.mxu2 %vm53_vm0, %v325_v1 }
 0x24f   :  { %v401_v4 = vpop.f32.mrf.mxu2 }
 0x250   :  { %v402_v5 = vadd.f32 %v401_v4, %v332_v3 }
 0x252   :  { %404 = vst [vmem:[#allocation3] sm:$0x1] %v402_v5 }
 0x253   :  { %415 = dma.vmem_to_hbm [thread:$0]  %s411_s11, 16, %s413_s14, [#allocation4]  }
 0x254   :  { %511 = dma.done.wait [#allocation4], 16  }
 0x255   :  { %512 = vsyncadd [#allocation4], 4294967280 }
 0x256   :  { %420 = vsyncpa [#allocation4], 1 }

</bundles_post_ra>
